<compile_context>
chip_gen: v7x
topology: tpu7x:2x2x1
jax: 0.10.0
libtpu: 0.0.40
codegen_flags: <defaults>
</compile_context>

<pallas_src>
import jax
import jax.numpy as jnp
from jax.experimental import pallas as pl
from jax.experimental.pallas import tpu as pltpu


def _round_up(x: int, m: int) -> int:
    return ((x + m - 1) // m) * m


def _moving_block_index(i):
    # x / output blocks: advance along the batch (sublane) axis.
    return (i, 0)


def _resident_block_index(i):
    # weights / packed biases: same block every grid step -> stay in VMEM.
    return (0, 0)


def _make_mlp_kernel(num_layers: int):
    """Kernel: `num_layers` Linear layers, ReLU between, log_softmax at the end."""

    def kernel(x_ref, *rest):
        o_ref = rest[-1]
        b_ref = rest[-2]          # packed biases, f32, (num_layers, bias_cols)
        w_refs = rest[:-2]        # per-layer weights, bf16, (in_pad, out[_pad])

        h = x_ref[...].astype(jnp.float32)                    # (bm, num_ins) f32
        for i in range(num_layers):
            w = w_refs[i][...]                                # bf16 (in_pad, out)
            out_dim = w.shape[1]                              # 128-mult except last
            b = b_ref[i:i + 1, :out_dim]                      # f32 (1, out)
            h = jnp.dot(h.astype(jnp.bfloat16), w,
                        preferred_element_type=jnp.float32) + b
            if i < num_layers - 1:                            # ReLU on hidden layers
                h = jnp.maximum(h, 0.0)

        # Numerically-stable log_softmax over the (unpadded) real output lanes.
        m = jnp.max(h, axis=-1, keepdims=True)
        s = h - m
        lse = jnp.log(jnp.sum(jnp.exp(s), axis=-1, keepdims=True))
        o_ref[...] = (s - lse).astype(o_ref.dtype)

    return kernel


def multilayer_model_forward(x, params, *, block_m: int = 2048,
                             out_dtype=jnp.float32):
    """x: (B, num_ins) f32.  params: list of (W, b) with W (in, out), b (out,)."""
    batch, num_ins = x.shape
    num_layers = len(params)
    num_outs = params[-1][0].shape[1]

    # --- batch tiling (no wrapper pad) -------------------------------------
    # Big tile to amortize per-step overhead; capped so >=2 tiles exist when
    # batch allows it (keeps both v7x TensorCores busy via the parallel axis).
    bm = max(8, min(block_m, _round_up(pl.cdiv(batch, 2), 8)))
    grid = (pl.cdiv(batch, bm),)

    # --- parameter packing ---------------------------------------------------
    # Hidden widths zero-padded to multiples of 128 (full-vreg bias/ReLU/cast);
    # the next layer's input rows are padded with zeros to match.  The final
    # layer keeps its real num_outs so the output path is unpadded.
    weights = []
    padded_biases = []
    in_dim = num_ins
    for li, (w, b) in enumerate(params):
        fan_in, fan_out = w.shape
        is_last = li == num_layers - 1
        out_pad = fan_out if is_last else _round_up(fan_out, 128)
        w_p = jnp.zeros((in_dim, out_pad), jnp.float32)
        w_p = w_p.at[:fan_in, :fan_out].set(w.astype(jnp.float32))
        b_p = jnp.zeros((out_pad,), jnp.float32).at[:fan_out].set(
            b.astype(jnp.float32))
        weights.append(w_p.astype(jnp.bfloat16))               # MXU operand dtype
        padded_biases.append(b_p)
        in_dim = out_pad

    # All biases packed into one f32 (num_layers, bias_cols) VMEM-resident array.
    out_dims = [w.shape[1] for w in weights]
    bias_cols = max(_round_up(d, 128) for d in out_dims)
    biases = jnp.zeros((num_layers, bias_cols), jnp.float32)
    for li, b_p in enumerate(padded_biases):
        biases = biases.at[li, :b_p.shape[0]].set(b_p)

    in_specs = [pl.BlockSpec((bm, num_ins), _moving_block_index)]
    for w in weights:
        in_specs.append(pl.BlockSpec(w.shape, _resident_block_index))
    in_specs.append(pl.BlockSpec(biases.shape, _resident_block_index))
    # Output block last dim equals the full array dim (num_outs) -> legal,
    # unpadded writeback, no wrapper slice / extra HBM round-trip.
    out_spec = pl.BlockSpec((bm, num_outs), _moving_block_index)

    kernel = _make_mlp_kernel(num_layers)

    out = pl.pallas_call(
        kernel,
        out_shape=jax.ShapeDtypeStruct((batch, num_outs), out_dtype),
        grid=grid,
        in_specs=in_specs,
        out_specs=out_spec,
        compiler_params=pltpu.CompilerParams(
            dimension_semantics=("parallel",),      # batch tiles are independent
            vmem_limit_bytes=32 * 1024 * 1024,      # > v5e's 16 MiB default
        ),
    )(x, *weights, biases)

    return out


def _init_params(key, num_ins, layer_sizes, num_outs):
    """Deterministic PyTorch-Linear-style init: U(-1/sqrt(fan_in), 1/sqrt(fan_in))."""
    params = []
    dims = [num_ins] + list(layer_sizes) + [num_outs]
    for i in range(len(dims) - 1):
        fan_in, fan_out = dims[i], dims[i + 1]
        key, kw, kb = jax.random.split(key, 3)
        bound = 1.0 / jnp.sqrt(float(fan_in))
        w = jax.random.uniform(kw, (fan_in, fan_out), jnp.float32, -bound, bound)
        b = jax.random.uniform(kb, (fan_out,), jnp.float32, -bound, bound)
        params.append((w, b))
    return params


def _reference_forward(x, params):
    # Matches the kernel numerics: bf16 matmul operands, f32 accumulation,
    # f32 bias / ReLU / log_softmax.  (Zero-padding in the kernel adds exact
    # zeros, so results are identical to this unpadded reference.)
    h = x.astype(jnp.float32)
    for i, (w, b) in enumerate(params):
        h = jnp.dot(h.astype(jnp.bfloat16), w.astype(jnp.bfloat16),
                    preferred_element_type=jnp.float32) + b.astype(jnp.float32)
        if i < len(params) - 1:
            h = jnp.maximum(h, 0.0)
    return jax.nn.log_softmax(h, axis=1)


if __name__ == "__main__":
    # Shapes consistent with MultilayerModel(num_ins=32, layer_sizes=[64, 32],
    # num_outs=16, prob_dropout=0.1).
    batch = 8
    num_ins = 32
    layer_sizes = [64, 32]
    num_outs = 16

    key = jax.random.PRNGKey(0)
    key, kx = jax.random.split(key)
    x = jax.random.normal(kx, (batch, num_ins), dtype=jnp.float32)
    params = _init_params(key, num_ins, layer_sizes, num_outs)

    out = jax.block_until_ready(multilayer_model_forward(x, params))
    ref = jax.block_until_ready(_reference_forward(x, params))

    assert out.shape == (batch, num_outs)
    assert bool(jnp.all(jnp.isfinite(out))), "non-finite outputs"
    assert jnp.allclose(out, ref, atol=2e-3, rtol=2e-3), "mismatch vs reference"

    print("KERNEL_OK")
</pallas_src>

<mosaic_0001>
module attributes {stable_mosaic.version = 11 : i64} {
  func.func @kernel(%arg0: i32, %arg1: memref<8x32xf32, #tpu.memory_space<vmem>>, %arg2: memref<32x128xbf16, #tpu.memory_space<vmem>>, %arg3: memref<128x128xbf16, #tpu.memory_space<vmem>>, %arg4: memref<128x16xbf16, #tpu.memory_space<vmem>>, %arg5: memref<3x128xf32, #tpu.memory_space<vmem>>, %arg6: memref<8x16xf32, #tpu.memory_space<vmem>>) attributes {dimension_semantics = [#tpu.dimension_semantics<parallel>], iteration_bounds = array<i64: 1>, scalar_prefetch = 0 : i64, scratch_operands = 0 : i64, tpu.core_type = #tpu.core_type<tc>, window_params = [{transform_indices = @transform_0, window_bounds = array<i64: 8, 32>}, {pipeline_mode = #tpu.pipeline_mode<synchronous>, transform_indices = @transform_1, window_bounds = array<i64: 32, 128>}, {pipeline_mode = #tpu.pipeline_mode<synchronous>, transform_indices = @transform_2, window_bounds = array<i64: 128, 128>}, {pipeline_mode = #tpu.pipeline_mode<synchronous>, transform_indices = @transform_3, window_bounds = array<i64: 128, 16>}, {pipeline_mode = #tpu.pipeline_mode<synchronous>, transform_indices = @transform_4, window_bounds = array<i64: 3, 128>}, {transform_indices = @transform_5, window_bounds = array<i64: 8, 16>}]} {
    %c0 = arith.constant 0 : index
    %c0_0 = arith.constant 0 : index
    %0 = vector.load %arg1[%c0, %c0_0] : memref<8x32xf32, #tpu.memory_space<vmem>>, vector<8x32xf32>
    %c0_1 = arith.constant 0 : index
    %c0_2 = arith.constant 0 : index
    %1 = vector.load %arg2[%c0_1, %c0_2] : memref<32x128xbf16, #tpu.memory_space<vmem>>, vector<32x128xbf16>
    %c0_3 = arith.constant 0 : index
    %c0_4 = arith.constant 0 : index
    %2 = vector.load %arg5[%c0_3, %c0_4] : memref<3x128xf32, #tpu.memory_space<vmem>>, vector<1x128xf32>
    %3 = arith.truncf %0 : vector<8x32xf32> to vector<8x32xbf16>
    %cst = arith.constant dense<0.000000e+00> : vector<8x128xf32>
    %4 = tpu.matmul %3, %1, %cst {dimension_numbers = #tpu.dot_dimension_numbers<[1], [0], [0], [1], [0, 0, 1, 1], [], []>} : vector<8x32xbf16>, vector<32x128xbf16>, vector<8x128xf32> -> vector<8x128xf32>
    %5 = vector.broadcast %2 : vector<1x128xf32> to vector<8x128xf32>
    %6 = arith.addf %4, %5 : vector<8x128xf32>
    %cst_5 = arith.constant 0.000000e+00 : f32
    %7 = vector.broadcast %cst_5 : f32 to vector<8x128xf32>
    %8 = arith.maximumf %6, %7 : vector<8x128xf32>
    %c0_6 = arith.constant 0 : index
    %c0_7 = arith.constant 0 : index
    %9 = vector.load %arg3[%c0_6, %c0_7] : memref<128x128xbf16, #tpu.memory_space<vmem>>, vector<128x128xbf16>
    %c1 = arith.constant 1 : index
    %c0_8 = arith.constant 0 : index
    %10 = vector.load %arg5[%c1, %c0_8] : memref<3x128xf32, #tpu.memory_space<vmem>>, vector<1x128xf32>
    %11 = arith.truncf %8 : vector<8x128xf32> to vector<8x128xbf16>
    %cst_9 = arith.constant dense<0.000000e+00> : vector<8x128xf32>
    %12 = tpu.matmul %11, %9, %cst_9 {dimension_numbers = #tpu.dot_dimension_numbers<[1], [0], [0], [1], [0, 0, 1, 1], [], []>} : vector<8x128xbf16>, vector<128x128xbf16>, vector<8x128xf32> -> vector<8x128xf32>
    %13 = vector.broadcast %10 : vector<1x128xf32> to vector<8x128xf32>
    %14 = arith.addf %12, %13 : vector<8x128xf32>
    %cst_10 = arith.constant 0.000000e+00 : f32
    %15 = vector.broadcast %cst_10 : f32 to vector<8x128xf32>
    %16 = arith.maximumf %14, %15 : vector<8x128xf32>
    %c0_11 = arith.constant 0 : index
    %c0_12 = arith.constant 0 : index
    %17 = vector.load %arg4[%c0_11, %c0_12] : memref<128x16xbf16, #tpu.memory_space<vmem>>, vector<128x16xbf16>
    %c2 = arith.constant 2 : index
    %c0_13 = arith.constant 0 : index
    %18 = vector.load %arg5[%c2, %c0_13] : memref<3x128xf32, #tpu.memory_space<vmem>>, vector<1x16xf32>
    %19 = arith.truncf %16 : vector<8x128xf32> to vector<8x128xbf16>
    %cst_14 = arith.constant dense<0.000000e+00> : vector<8x16xf32>
    %20 = tpu.matmul %19, %17, %cst_14 {dimension_numbers = #tpu.dot_dimension_numbers<[1], [0], [0], [1], [0, 0, 1, 1], [], []>} : vector<8x128xbf16>, vector<128x16xbf16>, vector<8x16xf32> -> vector<8x16xf32>
    %21 = vector.broadcast %18 : vector<1x16xf32> to vector<8x16xf32>
    %22 = arith.addf %20, %21 : vector<8x16xf32>
    %cst_15 = arith.constant dense<0xFF800000> : vector<8xf32>
    %23 = vector.multi_reduction <maximumf>, %22, %cst_15 [1] : vector<8x16xf32> to vector<8xf32>
    %24 = vector.shape_cast %23 : vector<8xf32> to vector<8x1xf32>
    %25 = vector.broadcast %24 : vector<8x1xf32> to vector<8x16xf32>
    %26 = arith.subf %22, %25 : vector<8x16xf32>
    %27 = math.exp %26 : vector<8x16xf32>
    %cst_16 = arith.constant dense<0.000000e+00> : vector<8xf32>
    %28 = vector.multi_reduction <add>, %27, %cst_16 [1] : vector<8x16xf32> to vector<8xf32>
    %29 = vector.shape_cast %28 : vector<8xf32> to vector<8x1xf32>
    %30 = math.log %29 : vector<8x1xf32>
    %31 = vector.broadcast %30 : vector<8x1xf32> to vector<8x16xf32>
    %32 = arith.subf %26, %31 : vector<8x16xf32>
    %c0_17 = arith.constant 0 : index
    %c0_18 = arith.constant 0 : index
    %33 = vector.load %arg6[%c0_17, %c0_18] : memref<8x16xf32, #tpu.memory_space<vmem>>, vector<8x16xf32>
    tpu.vector_store %arg6[%c0_17, %c0_18], %32 {strides = array<i32>} : memref<8x16xf32, #tpu.memory_space<vmem>>, vector<8x16xf32>,
    return
  }
  func.func @transform_0(%arg0: i32) -> (i32, i32) {
    %c0_i32 = arith.constant 0 : i32
    %c0_i32_0 = arith.constant 0 : i32
    return %arg0, %c0_i32 : i32, i32
  }
  func.func @transform_1(%arg0: i32) -> (i32, i32) {
    %c0_i32 = arith.constant 0 : i32
    %c0_i32_0 = arith.constant 0 : i32
    %c0_i32_1 = arith.constant 0 : i32
    return %c0_i32, %c0_i32_0 : i32, i32
  }
  func.func @transform_2(%arg0: i32) -> (i32, i32) {
    %c0_i32 = arith.constant 0 : i32
    %c0_i32_0 = arith.constant 0 : i32
    %c0_i32_1 = arith.constant 0 : i32
    return %c0_i32, %c0_i32_0 : i32, i32
  }
  func.func @transform_3(%arg0: i32) -> (i32, i32) {
    %c0_i32 = arith.constant 0 : i32
    %c0_i32_0 = arith.constant 0 : i32
    %c0_i32_1 = arith.constant 0 : i32
    return %c0_i32, %c0_i32_0 : i32, i32
  }
  func.func @transform_4(%arg0: i32) -> (i32, i32) {
    %c0_i32 = arith.constant 0 : i32
    %c0_i32_0 = arith.constant 0 : i32
    %c0_i32_1 = arith.constant 0 : i32
    return %c0_i32, %c0_i32_0 : i32, i32
  }
  func.func @transform_5(%arg0: i32) -> (i32, i32) {
    %c0_i32 = arith.constant 0 : i32
    %c0_i32_0 = arith.constant 0 : i32
    return %arg0, %c0_i32 : i32, i32
  }
}

</mosaic_0001>

<bundles_post_ra>
// kernel: tpu_custom_call.1
= control target key start
LH: loop header
LB: loop body
LE: loop exit
PB: predicated region body
PF: predicated region fallthrough
CT: control target
= control target key end

     0   :  { %10 = vsyncpa [#allocation3], 0  ;;  %s668_s0 = inlined_call_operand.vmem [shape: f32[8,32], index: 0, kind: input, shape index: {}]   ;;  %s669_s1 = inlined_call_operand.hbm [shape: bf16[32,128], index: 1, kind: input, shape index: {}]   ;;  %s670_s2 = inlined_call_operand.vmem [shape: bf16[128,128], index: 2, kind: input, shape index: {}]   ;;  %s671_s3 = inlined_call_operand.vmem [shape: bf16[128,16], index: 3, kind: input, shape index: {}]   ;;  %s672_s4 = inlined_call_operand.vmem [shape: f32[3,128], index: 4, kind: input, shape index: {}]   ;;  %s673_s5 = inlined_call_operand.hbm [shape: f32[8,16], index: 5, kind: output, shape index: {}]  }
   0x1   :  { %11 = vsyncpa [#allocation4], 0  ;;  %s521_s18 = smov [#allocation2]   ;;  %s473_s22 = scalar_lea.hbm %s669_s1, 256 }
   0x2   :  { %s19_s19 = sshll.u32 %s521_s18, 4  ;;  %p474_p0 = scmp.ne.s32.totalorder %s669_s1, %s473_s22  ;;  %s20_s19 = int_to_ptr.vmem [resolvable:$true] %s19_s19 }
   0x3   :  { %p477_p1 = scmp.lt.u32.totalorder %s473_s22, %s669_s1 }
   0x5   :  { %p479_p2 = pnand %p477_p1, %p474_p0 }
   0x7   :  { %482 = shalt.err (!%p479_p2)
}
   0x8   :  { %s483_s27 = scalar_lea.vmem %s20_s19, 256  ;;  %p488_p4 = scmp.lt.s32.totalorder %s20_s19, %s20_s19 }
   0x9   :  { %p484_p3 = scmp.ne.s32.totalorder %s20_s19, %s483_s27  ;;  %p489_p5 = scmp.lt.s32.totalorder %s483_s27, %s483_s27 }
   0xb   :  { %p490_p6 = por %p489_p5, %p488_p4 }
   0xd   :  { %p491_p7 = pnand %p490_p6, %p484_p3 }
   0xf   :  { %494 = shalt.err (!%p491_p7)
}
  0x10   :  { %s522_s28 = smov 64   ;;  %s523_s29 = smov 4  }
  0x11   :  { %25 = dma.hbm_to_vmem [thread:$0]  %s669_s1, 256, %s20_s19, [#allocation3], %s522_s28, %s522_s28, %s523_s29  }
  0x12   :  { %517 = dma.done.wait [#allocation3], 256  }
  0x13   :  { %518 = vsyncadd [#allocation3], 4294967040  ;;  %v524_v0 = vmov 0.0   ;;  %vm525_vm0 = vmmov 0   ;;  %v451_v1 = vld [vmem:[#allocation2] sm:$0xff]   ;;  %v452_v2 = vld [vmem:[#allocation2 + $0x8] sm:$0xff]  }
  0x14   :  { %397 = vmatprep.subr.bf16.mxu0 %v524_v0  ;;  %401 = vmatprep.mubr.msk.bf16.mxu0 %vm525_vm0, %v524_v0  ;;  %v36_v3 = vld [vmem:[%s668_s0] sm:$0xff]  ;;  %v454_v6 = vld [vmem:[%s670_s2 + $0x8] sm:$0xff]   ;;  %vm59_vm1 = vcmask 261120   ;;  %v455_v7 = vld [vmem:[%s670_s2 + $0x10] sm:$0xff]   ;;  %vm325_vm2 = vcmask 130048  }
  0x15   :  { %405 = vmatprep.subr.bf16.mxu1 %v524_v0  ;;  %421 = vmatprep.mubr.msk.bf16.mxu1 %vm525_vm0, %v524_v0  ;;  %v453_v4 = vld [vmem:[%s670_s2] sm:$0xff]   ;;  %v42_v5 = vpack.c.bf16 %v36_v3, %v36_v3  ;;  %v456_v8 = vld [vmem:[%s670_s2 + $0x18] sm:$0xff]   ;;  %v458_v10 = vld [vmem:[%s670_s2 + $0x28] sm:$0xff]  }
  0x16   :  { %398 = vmatpush3.bf16.msra.mxu0 %v451_v1  ;;  %406 = vmatpush3.bf16.msra.mxu1 %v453_v4  ;;  %v457_v9 = vld [vmem:[%s670_s2 + $0x20] sm:$0xff]   ;;  %v459_v11 = vld [vmem:[%s670_s2 + $0x30] sm:$0xff]   ;;  %v460_v12 = vld [vmem:[%s670_s2 + $0x38] sm:$0xff]  }
  0x17   :  { %399 = vmatprep.subr.bf16.mxu0 %v524_v0  ;;  %407 = vmatprep.subr.bf16.mxu1 %v524_v0  ;;  %v461_v13 = vld [vmem:[%s671_s3] sm:$0xff]   ;;  %v462_v14 = vld [vmem:[%s671_s3 + $0x8] sm:$0xff]   ;;  %v463_v15 = vld [vmem:[%s671_s3 + $0x10] sm:$0xff]  }
  0x18   :  { %v464_v16 = vld [vmem:[%s671_s3 + $0x18] sm:$0xff]   ;;  %v465_v17 = vld [vmem:[%s671_s3 + $0x20] sm:$0xff]   ;;  %v466_v18 = vld [vmem:[%s671_s3 + $0x28] sm:$0xff]  }
  0x19   :  { %v354_v19 = vld [vmem:[%s672_s4] ss:$0 sm:$0xff]  ;;  %v467_v27 = vld [vmem:[%s671_s3 + $0x30] sm:$0xff]   ;;  %v468_v28 = vld [vmem:[%s671_s3 + $0x38] sm:$0xff]   ;;  %s526_s3 = smov [#allocation5]  }
  0x1a   :  { %400 = vmatpush3.bf16.msra.mxu0 %v452_v2  ;;  %408 = vmatpush3.bf16.msra.mxu1 %v454_v6  ;;  %v358_v29 = vld [vmem:[%s672_s4 + $0x1] ss:$0 sm:$0xff]  ;;  %v367_v37 = vld [vmem:[%s672_s4 + $0x2] ss:$0 sm:$0xff]  ;;  %s345_s4 = sshll.u32 %s526_s3, 4  ;;  %s346_s4 = int_to_ptr.vmem [resolvable:$true] %s345_s4 }
  0x1b   :  { %425 = vmatprep.subr.bf16.mxu0 %v524_v0  ;;  %409 = vmatprep.subr.bf16.mxu1 %v524_v0  ;;  %s495_s17 = scalar_lea.vmem %s346_s4, 128  ;;  %p500_p9 = scmp.lt.s32.totalorder %s346_s4, %s346_s4 }
  0x1c   :  { %p496_p8 = scmp.ne.s32.totalorder %s346_s4, %s495_s17  ;;  %p501_p10 = scmp.lt.s32.totalorder %s495_s17, %s495_s17 }
  0x1d   :  { %402 = vmatmul.mubr.msk.bf16.vlgmr.msra.gmra.mrb[0].mxu0 %vm59_vm1, %v42_v5 }
  0x1e   :  { %441 = vmatprep.mubr.msk.bf16.mxu0 %vm525_vm0, %v524_v0  ;;  %410 = vmatpush3.bf16.msra.mxu1 %v455_v7  ;;  %p502_p11 = por %p501_p10, %p500_p9 }
  0x1f   :  { %411 = vmatprep.subr.bf16.mxu1 %v524_v0  ;;  %426 = vmatpush3.bf16.msra.mxu0 %v461_v13 }
  0x20   :  { %427 = vmatprep.subr.bf16.mxu0 %v524_v0  ;;  %p503_p12 = pnand %p502_p11, %p496_p8 }
  0x22   :  { %412 = vmatpush3.bf16.msra.mxu1 %v456_v8 }
  0x23   :  { %413 = vmatprep.subr.bf16.mxu1 %v524_v0  ;;  %428 = vmatpush3.bf16.msra.mxu0 %v462_v14 }
  0x24   :  { %429 = vmatprep.subr.bf16.mxu0 %v524_v0 }
  0x26   :  { %414 = vmatpush3.bf16.msra.mxu1 %v457_v9 }
  0x27   :  { %415 = vmatprep.subr.bf16.mxu1 %v524_v0  ;;  %430 = vmatpush3.bf16.msra.mxu0 %v463_v15 }
  0x28   :  { %431 = vmatprep.subr.bf16.mxu0 %v524_v0 }
  0x2a   :  { %416 = vmatpush3.bf16.msra.mxu1 %v458_v10 }
  0x2b   :  { %417 = vmatprep.subr.bf16.mxu1 %v524_v0  ;;  %432 = vmatpush3.bf16.msra.mxu0 %v464_v16 }
  0x2c   :  { %433 = vmatprep.subr.bf16.mxu0 %v524_v0 }
  0x2e   :  { %418 = vmatpush3.bf16.msra.mxu1 %v459_v11 }
  0x2f   :  { %419 = vmatprep.subr.bf16.mxu1 %v524_v0  ;;  %434 = vmatpush3.bf16.msra.mxu0 %v465_v17 }
  0x30   :  { %435 = vmatprep.subr.bf16.mxu0 %v524_v0 }
  0x32   :  { %420 = vmatpush3.bf16.msra.mxu1 %v460_v12 }
  0x33   :  { %436 = vmatpush3.bf16.msra.mxu0 %v466_v18 }
  0x34   :  { %437 = vmatprep.subr.bf16.mxu0 %v524_v0 }
  0x37   :  { %438 = vmatpush3.bf16.msra.mxu0 %v467_v27 }
  0x38   :  { %439 = vmatprep.subr.bf16.mxu0 %v524_v0 }
  0x3b   :  { %440 = vmatpush3.bf16.msra.mxu0 %v468_v28 }
  0xf0   :  { %v97_v20 = vpop.f32.mrb[0].mxu0 }
  0xf1   :  { %v98_v21 = vadd.f32 %v354_v19, %v97_v20  ;;  %v403_v22 = vpop.f32.mrb[1].mxu0 }
  0xf2   :  { %v100_v23 = vpop.f32.mrb[2].mxu0 }
  0xf3   :  { %v103_v24 = vmax.f32 %v98_v21, 0.0  ;;  %v404_v25 = vpop.f32.mrb[3].mxu0 }
  0xf5   :  { %v121_v26 = vpack.c.bf16 %v103_v24, %v103_v24 }
  0xf7   :  { %422 = vmatmul.mubr.bf16.vlgmr.msra.gmra.mrb[0].mxu1 %v121_v26 }
 0x1ca   :  { %v208_v30 = vpop.f32.mrb[0].mxu1 }
 0x1cb   :  { %v209_v31 = vadd.f32 %v358_v29, %v208_v30  ;;  %v423_v32 = vpop.f32.mrb[1].mxu1 }
 0x1cc   :  { %v211_v33 = vpop.f32.mrb[2].mxu1 }
 0x1cd   :  { %v214_v34 = vmax.f32 %v209_v31, 0.0  ;;  %v424_v35 = vpop.f32.mrb[3].mxu1 }
 0x1cf   :  { %v232_v36 = vpack.c.bf16 %v214_v34, %v214_v34 }
 0x1d1   :  { %442 = vmatmul.mubr.bf16.vlgmr.msra.gmra.mrb[4].mxu0 %v232_v36 }
 0x2a4   :  { %v319_v38 = vpop.f32.mrb[4].mxu0 }
 0x2a5   :  { %v320_v39 = vadd.f32 %v367_v37, %v319_v38  ;;  %v443_v40 = vpop.f32.mrb[5].mxu0 }
 0x2a6   :  { %v322_v41 = vpop.f32.mrb[6].mxu0 }
 0x2a7   :  { %v444_v42 = vpop.f32.mrb[7].mxu0  ;;  %v326_v43 = vsel %vm325_vm2, %v320_v39, -inf }
 0x2a8   :  { %327 = vmax.xlane.f32.xlu0 %v326_v43 }
 0x335   :  { %v328_v44 = vpop.xlane.xlu0 %327 }
 0x336   :  { %v329_v45 = vsub.f32 %v320_v39, %v328_v44 }
 0x338   :  { %v330_v46 = vmul.f32 1.442695, %v329_v45 }
 0x33a   :  { %469 = vpow2.f32 %v330_v46 }
 0x344   :  { %v470_v47 = vpop.eup %469 }
 0x345   :  { %v332_v48 = vsel %vm325_vm2, %v470_v47, 0.0 }
 0x346   :  { %333 = vadd.xlane.f32.xlu0 %v332_v48 }
 0x3d3   :  { %v334_v49 = vpop.xlane.xlu0 %333 }
 0x3d4   :  { %471 = vlog2.f32 %v334_v49 }
 0x3de   :  { %v472_v50 = vpop.eup %471 }
 0x3df   :  { %v336_v51 = vmul.f32 0.6931472, %v472_v50 }
 0x3e1   :  { %v337_v52 = vsub.f32 %v329_v45, %v336_v51 }
 0x3e3   :  { %338 = vst.msk [vmem:[#allocation5] sm:$0xff] %vm325_vm2, %v337_v52 }
 0x3e4   :  { %506 = shalt.err (!%p503_p12)
}
 0x3e5   :  { %s507_s20 = scalar_lea.hbm %s673_s5, 128 }
 0x3e6   :  { %p508_p13 = scmp.ne.s32.totalorder %s673_s5, %s507_s20  ;;  %p511_p0 = scmp.lt.u32.totalorder %s507_s20, %s673_s5 }
 0x3e8   :  { %p513_p1 = pnand %p511_p0, %p508_p13 }
 0x3ea   :  { %516 = shalt.err (!%p513_p1)
}
 0x3eb   :  { %348 = dma.vmem_to_hbm [thread:$0]  %s346_s4, 128, %s673_s5, [#allocation4]  }
 0x3ec   :  { %519 = dma.done.wait [#allocation4], 128  }
 0x3ed   :  { %520 = vsyncadd [#allocation4], 4294967168 }
 0x3ee   :  { %352 = vsyncpa [#allocation3], 1 }
 0x3ef   :  { %353 = vsyncpa [#allocation4], 1 }

</bundles_post_ra>
